<compile_context>
chip_gen: v7x
topology: tpu7x:2x2x1
jax: 0.10.0
libtpu: 0.0.40
codegen_flags: <defaults>
</compile_context>

<pallas_src>
import functools
from itertools import permutations

import numpy as np
import jax
import jax.numpy as jnp
from jax.experimental import pallas as pl
from jax.experimental.pallas import tpu as pltpu


def _round_up(x, m):
    return ((x + m - 1) // m) * m


# ----------------------------------------------------------------------------- kernel
def _critic_kernel(P, TB, Din_p, H2, Dop, Hr2, Qop,
                   x_ref, w_ref, b_ref, q_ref):
    f32 = jnp.float32
    cd = w_ref.dtype

    # Static row offsets into the packed weight slab / bias row.
    r2 = Din_p            # layer-2 (phi) block
    r3 = r2 + H2          # rho layer-1 block
    r4 = r3 + Dop         # rho layer-2 block
    cb2 = H2
    cb3 = cb2 + Dop
    cb4 = cb3 + Hr2

    # [P, TB, Din_p] -> [P*TB, Din_p] (TB % 8 == 0 and lane dim unchanged -> layout-free)
    x = x_ref[...].reshape(P * TB, Din_p)

    # Layer 1 of BOTH phi towers (lane-concatenated): [P*TB, Din_p] @ [Din_p, 2H]
    h = jnp.dot(x, w_ref[0:Din_p, 0:H2], preferred_element_type=f32)
    h = jnp.maximum(h + b_ref[0:1, 0:H2], 0.0)                       # f32 epilogue

    # Layer 2 of both phi towers, block-diagonal, lane-padded to Dop(=128).
    o = jnp.dot(h.astype(cd), w_ref[r2:r3, 0:Dop], preferred_element_type=f32)
    o = jnp.maximum(o + b_ref[0:1, cb2:cb3], 0.0)                    # [P*TB, Dop]

    # Deep-set pooling over the permutation axis (reshape-sum, no concat copies).
    s = o.reshape(P, TB, Dop).sum(axis=0)                            # [TB, Dop]

    # rho layer 1, block-diagonal: [TB, Dop] @ [Dop, 2Hr]
    r = jnp.dot(s.astype(cd), w_ref[r3:r4, 0:Hr2], preferred_element_type=f32)
    r = jnp.maximum(r + b_ref[0:1, cb3:cb4], 0.0)                    # [TB, 2Hr]

    # rho layer 2, block-diagonal, lane-dense (Qop=128) output store.
    q = jnp.dot(r.astype(cd), w_ref[r4:r4 + Hr2, 0:Qop], preferred_element_type=f32)
    q_ref[...] = q + b_ref[0:1, cb4:cb4 + Qop]                       # [TB, Qop] f32


# ----------------------------------------------------------------------------- one-time weight packing
def prepare_critic_params(params, *, compute_dtype=jnp.bfloat16):
    """Fuse the two phi/rho towers into block-diagonal weights, lane-pad the tiny
    output dims to 128, and pack everything into one weight slab + one bias row.
    Call ONCE outside the training/acting step (hoisted per perf review)."""
    p = {k: np.asarray(v, np.float32) for k, v in params.items()}
    Din, H = p['phi_w1'].shape
    Do = p['phi_w2'].shape[1]
    Hr = p['rho_w1'].shape[1]
    Qo = p['rho_w2'].shape[1]

    H2, Do2, Hr2, Qo2 = 2 * H, 2 * Do, 2 * Hr, 2 * Qo
    Din_p = _round_up(Din, 64)           # aligned K for layer 1 (zero-padded)
    Dop = _round_up(Do2, 128)            # lane-dense phi output / rho input
    Qop = _round_up(Qo2, 128)            # lane-dense q output
    LW = max(H2, Hr2, Dop, Qop)
    assert H2 % 128 == 0 and Hr2 % 128 == 0, "hidden widths must be lane multiples"

    r2 = Din_p
    r3 = r2 + H2
    r4 = r3 + Dop
    W_rows = r4 + Hr2

    w = np.zeros((W_rows, LW), np.float32)
    # layer 1 of both phi towers, lane-concatenated: [Din, 2H]
    w[:Din, :H] = p['phi_w1']
    w[:Din, H:H2] = p['phi_w3']
    # layer 2 of both phi towers, block-diagonal: [2H, 2Do] (lane-padded to Dop)
    w[r2:r2 + H, :Do] = p['phi_w2']
    w[r2 + H:r2 + H2, Do:Do2] = p['phi_w4']
    # rho layer 1, block-diagonal: [2Do, 2Hr] (rows padded to Dop with zeros)
    w[r3:r3 + Do, :Hr] = p['rho_w1']
    w[r3 + Do:r3 + Do2, Hr:Hr2] = p['rho_w3']
    # rho layer 2, block-diagonal: [2Hr, 2Qo] (lane-padded to Qop)
    w[r4:r4 + Hr, :Qo] = p['rho_w2']
    w[r4 + Hr:r4 + Hr2, Qo:Qo2] = p['rho_w4']

    BCOLS = H2 + Dop + Hr2 + Qop
    b = np.zeros((1, BCOLS), np.float32)
    b[0, :H] = p['phi_b1'].reshape(-1)
    b[0, H:H2] = p['phi_b3'].reshape(-1)
    c = H2
    b[0, c:c + Do] = p['phi_b2'].reshape(-1)
    b[0, c + Do:c + Do2] = p['phi_b4'].reshape(-1)
    c += Dop
    b[0, c:c + Hr] = p['rho_b1'].reshape(-1)
    b[0, c + Hr:c + Hr2] = p['rho_b3'].reshape(-1)
    c += Hr2
    b[0, c:c + Qo] = p['rho_b2'].reshape(-1)
    b[0, c + Qo:c + Qo2] = p['rho_b4'].reshape(-1)

    return {
        'w': jnp.asarray(w, dtype=compute_dtype),    # [W_rows, LW]  packed weights
        'b': jnp.asarray(b, dtype=jnp.float32),      # [1, BCOLS]    packed biases (f32)
        'dims': dict(Din=Din, Din_p=Din_p, H2=H2, Do=Do, Dop=Dop, Hr2=Hr2,
                     Qo=Qo, Qop=Qop, W_rows=W_rows, LW=LW, BCOLS=BCOLS),
    }


# ----------------------------------------------------------------------------- input construction
def _build_phi_input(obs, ag, g, act, *, nb_objects, obj_ids, dim_body, dim_object, one_hot):
    """Reproduces the torch concat/stack exactly. Returns [P, B, D_in]."""
    B = obs.shape[0]
    obs_body = obs[:, :dim_body]
    obs_objects = []
    for i in range(nb_objects):
        oh = jnp.tile(one_hot[i][None, :], (B, 1))
        obs_objects.append(jnp.concatenate(
            [oh, obs[:, dim_body + dim_object * i: dim_body + dim_object * (i + 1)]],
            axis=1))
    rows = []
    for i, j in permutations(range(nb_objects), 2):
        rows.append(jnp.concatenate(
            [ag[:, obj_ids[i]], ag[:, obj_ids[j]],
             g[:, obj_ids[i]], g[:, obj_ids[j]],
             obs_body, obs_objects[i], obs_objects[j], act], axis=1))
    return jnp.stack(rows)


# ----------------------------------------------------------------------------- forward
def continuous_critic_forward(prepared, obs, ag, g, act, *, nb_objects, obj_ids,
                              dim_body, dim_object, one_hot, tile_b=None):
    d = prepared['dims']
    compute_dtype = prepared['w'].dtype
    cbytes = prepared['w'].dtype.itemsize

    inp = _build_phi_input(obs, ag, g, act, nb_objects=nb_objects, obj_ids=obj_ids,
                           dim_body=dim_body, dim_object=dim_object, one_hot=one_hot)
    P, B, Din = inp.shape
    assert Din == d['Din']

    # Batch tile: multiple of 8, <= 512 rows (bounds VMEM on v5e/v7x, enables
    # double-buffered pipelining and v7x megacore sharding for large batches).
    if tile_b is None:
        tile_b = _round_up(B, 8) if B <= 256 else 256
    TB = _round_up(min(int(tile_b), 512), 8)
    Bp = _round_up(B, TB)

    # Zero-pad batch to a tile multiple and features to Din_p (padded q rows are
    # garbage but sliced off below; no in-kernel batch reduction exists).
    x = jnp.pad(inp, ((0, 0), (0, Bp - B), (0, d['Din_p'] - Din))).astype(compute_dtype)

    # Per-grid-step VMEM estimate (generous) -> explicit scoped-VMEM limit.
    n_rows = P * TB
    vmem_est = (2 * P * TB * d['Din_p'] * cbytes          # input tile (double-buffered)
                + 2 * d['W_rows'] * d['LW'] * cbytes      # weight slab
                + 2 * d['BCOLS'] * 4                      # bias row
                + n_rows * d['H2'] * (4 + cbytes)         # h (f32) + MXU-operand cast
                + n_rows * d['Dop'] * 4                   # o (f32)
                + TB * (d['Dop'] + 2 * d['Hr2']) * 4      # s, r
                + 2 * TB * d['Qop'] * 4)                  # output tile (double-buffered)
    vmem_limit = int(min(2 * vmem_est + (4 << 20), 56 << 20))

    flops = (2 * P * Bp * d['Din_p'] * d['H2']
             + 2 * P * Bp * d['H2'] * d['Dop']
             + 2 * Bp * d['Dop'] * d['Hr2']
             + 2 * Bp * d['Hr2'] * d['Qop'])
    bytes_accessed = (x.size * cbytes + prepared['w'].size * cbytes
                      + prepared['b'].size * 4 + Bp * d['Qop'] * 4)

    kernel = functools.partial(_critic_kernel, P, TB, d['Din_p'], d['H2'],
                               d['Dop'], d['Hr2'], d['Qop'])
    q = pl.pallas_call(
        kernel,
        out_shape=jax.ShapeDtypeStruct((Bp, d['Qop']), jnp.float32),
        grid=(Bp // TB,),
        in_specs=[
            pl.BlockSpec((P, TB, d['Din_p']), lambda i: (0, i, 0)),    # batch-tiled input
            pl.BlockSpec((d['W_rows'], d['LW']), lambda i: (0, 0)),    # resident weight slab
            pl.BlockSpec((1, d['BCOLS']), lambda i: (0, 0)),           # resident bias row
        ],
        out_specs=pl.BlockSpec((TB, d['Qop']), lambda i: (i, 0)),      # lane-dense store
        compiler_params=pltpu.CompilerParams(
            dimension_semantics=("parallel",),
            vmem_limit_bytes=vmem_limit),
        cost_estimate=pl.CostEstimate(flops=int(flops), transcendentals=0,
                                      bytes_accessed=int(bytes_accessed)),
    )(x, prepared['w'], prepared['b'])

    Qo = d['Qo']
    q1 = q[:B, 0:Qo]
    q2 = q[:B, Qo:2 * Qo]
    return q1, q2


# ----------------------------------------------------------------------------- reference
def reference_forward(params, inp):
    """Pure-JAX f32 reference of phi -> sum -> rho on the stacked input [P, B, D_in]."""
    relu = jax.nn.relu
    h1 = relu(inp @ params['phi_w1'] + params['phi_b1'])
    o1 = relu(h1 @ params['phi_w2'] + params['phi_b2'])
    h2 = relu(inp @ params['phi_w3'] + params['phi_b3'])
    o2 = relu(h2 @ params['phi_w4'] + params['phi_b4'])
    s1 = o1.sum(axis=0)
    s2 = o2.sum(axis=0)
    q1 = relu(s1 @ params['rho_w1'] + params['rho_b1']) @ params['rho_w2'] + params['rho_b2']
    q2 = relu(s2 @ params['rho_w3'] + params['rho_b3']) @ params['rho_w4'] + params['rho_b4']
    return q1, q2


# ----------------------------------------------------------------------------- demo / self-check
if __name__ == "__main__":
    key = jax.random.PRNGKey(0)

    # module configuration (consistent with the torch __init__)
    nb_objects = 3
    dim_body = 10
    dim_object = 6
    per_obj_goal = 2
    goal_dim = nb_objects * per_obj_goal
    obj_ids = [np.arange(i * per_obj_goal, (i + 1) * per_obj_goal) for i in range(nb_objects)]
    act_dim = 4
    B = 2

    dim_phi_critic_input = 4 * per_obj_goal + dim_body + 2 * (nb_objects + dim_object) + act_dim  # 40
    dim_phi_critic_output = 32
    dim_rho_critic_input = dim_phi_critic_output
    dim_rho_critic_output = 1
    hidden = 256

    one_hot = [jnp.array([1.0, 0.0, 0.0], jnp.float32),
               jnp.array([0.0, 1.0, 0.0], jnp.float32),
               jnp.array([0.0, 0.0, 1.0], jnp.float32)]

    keys = jax.random.split(key, 24)

    def w(k, shape):
        return jax.random.normal(k, shape, jnp.float32) * 0.05

    params = {
        'phi_w1': w(keys[0], (dim_phi_critic_input, hidden)), 'phi_b1': w(keys[1], (1, hidden)),
        'phi_w2': w(keys[2], (hidden, dim_phi_critic_output)), 'phi_b2': w(keys[3], (1, dim_phi_critic_output)),
        'phi_w3': w(keys[4], (dim_phi_critic_input, hidden)), 'phi_b3': w(keys[5], (1, hidden)),
        'phi_w4': w(keys[6], (hidden, dim_phi_critic_output)), 'phi_b4': w(keys[7], (1, dim_phi_critic_output)),
        'rho_w1': w(keys[8], (dim_rho_critic_input, hidden)), 'rho_b1': w(keys[9], (1, hidden)),
        'rho_w2': w(keys[10], (hidden, dim_rho_critic_output)), 'rho_b2': w(keys[11], (1, dim_rho_critic_output)),
        'rho_w3': w(keys[12], (dim_rho_critic_input, hidden)), 'rho_b3': w(keys[13], (1, hidden)),
        'rho_w4': w(keys[14], (hidden, dim_rho_critic_output)), 'rho_b4': w(keys[15], (1, dim_rho_critic_output)),
    }

    obs = jax.random.normal(keys[16], (B, dim_body + nb_objects * dim_object), jnp.float32)
    ag = jax.random.normal(keys[17], (B, goal_dim), jnp.float32)
    g = jax.random.normal(keys[18], (B, goal_dim), jnp.float32)
    act = jax.random.normal(keys[19], (B, act_dim), jnp.float32)

    common = dict(nb_objects=nb_objects, obj_ids=obj_ids, dim_body=dim_body,
                  dim_object=dim_object, one_hot=one_hot)

    # pure-JAX f32 reference (exact module semantics)
    inp_ref = _build_phi_input(obs, ag, g, act, **common)
    rq1, rq2 = reference_forward(params, inp_ref)

    # Weight fusion / packing hoisted out of the forward path: done ONCE here.
    prep_f32 = prepare_critic_params(params, compute_dtype=jnp.float32)
    prep_bf16 = prepare_critic_params(params, compute_dtype=jnp.bfloat16)

    # 1) exact-semantics check: f32 compute path of the fused, packed kernel
    q1f, q2f = continuous_critic_forward(prep_f32, obs, ag, g, act, **common)
    jax.block_until_ready((q1f, q2f))
    np.testing.assert_allclose(np.asarray(q1f), np.asarray(rq1), rtol=1e-5, atol=1e-5)
    np.testing.assert_allclose(np.asarray(q2f), np.asarray(rq2), rtol=1e-5, atol=1e-5)

    # 2) bf16 MXU-operand path (halved DMA bytes, f32 accumulation + f32 epilogue);
    #    looser tolerance vs the f32 reference is expected and fine for an RL critic.
    q1b, q2b = continuous_critic_forward(prep_bf16, obs, ag, g, act, **common)
    jax.block_until_ready((q1b, q2b))
    np.testing.assert_allclose(np.asarray(q1b), np.asarray(rq1), rtol=5e-2, atol=5e-2)
    np.testing.assert_allclose(np.asarray(q2b), np.asarray(rq2), rtol=5e-2, atol=5e-2)

    # 3) multi-tile grid + batch-padding check: B=20, 8-row tiles -> 3 grid steps.
    B2 = 20
    k2 = jax.random.split(keys[20], 4)
    obs2 = jax.random.normal(k2[0], (B2, dim_body + nb_objects * dim_object), jnp.float32)
    ag2 = jax.random.normal(k2[1], (B2, goal_dim), jnp.float32)
    g2 = jax.random.normal(k2[2], (B2, goal_dim), jnp.float32)
    act2 = jax.random.normal(k2[3], (B2, act_dim), jnp.float32)
    rq1g, rq2g = reference_forward(params, _build_phi_input(obs2, ag2, g2, act2, **common))
    q1g, q2g = continuous_critic_forward(prep_f32, obs2, ag2, g2, act2, tile_b=8, **common)
    jax.block_until_ready((q1g, q2g))
    np.testing.assert_allclose(np.asarray(q1g), np.asarray(rq1g), rtol=1e-5, atol=1e-5)
    np.testing.assert_allclose(np.asarray(q2g), np.asarray(rq2g), rtol=1e-5, atol=1e-5)

    print("KERNEL_OK")
</pallas_src>

<mosaic_0001>
module attributes {stable_mosaic.version = 11 : i64} {
  func.func @_critic_kernel(%arg0: i32, %arg1: memref<6x8x64xf32, #tpu.memory_space<vmem>>, %arg2: memref<1216x512xf32, #tpu.memory_space<vmem>>, %arg3: memref<1x1280xf32, #tpu.memory_space<vmem>>, %arg4: memref<8x128xf32, #tpu.memory_space<vmem>>) attributes {dimension_semantics = [#tpu.dimension_semantics<parallel>], iteration_bounds = array<i64: 1>, scalar_prefetch = 0 : i64, scratch_operands = 0 : i64, tpu.core_type = #tpu.core_type<tc>, window_params = [{transform_indices = @transform_0, window_bounds = array<i64: 6, 8, 64>}, {pipeline_mode = #tpu.pipeline_mode<synchronous>, transform_indices = @transform_1, window_bounds = array<i64: 1216, 512>}, {pipeline_mode = #tpu.pipeline_mode<synchronous>, transform_indices = @transform_2, window_bounds = array<i64: 1, 1280>}, {transform_indices = @transform_3, window_bounds = array<i64: 8, 128>}]} {
    %c0 = arith.constant 0 : index
    %c0_0 = arith.constant 0 : index
    %c0_1 = arith.constant 0 : index
    %0 = vector.load %arg1[%c0, %c0_0, %c0_1] : memref<6x8x64xf32, #tpu.memory_space<vmem>>, vector<6x8x64xf32>
    %1 = vector.shape_cast %0 : vector<6x8x64xf32> to vector<48x64xf32>
    %c0_2 = arith.constant 0 : index
    %c0_3 = arith.constant 0 : index
    %2 = vector.load %arg2[%c0_2, %c0_3] : memref<1216x512xf32, #tpu.memory_space<vmem>>, vector<64x512xf32>
    %cst = arith.constant dense<0.000000e+00> : vector<48x512xf32>
    %3 = tpu.matmul %1, %2, %cst {dimension_numbers = #tpu.dot_dimension_numbers<[1], [0], [0], [1], [0, 0, 1, 1], [], []>} : vector<48x64xf32>, vector<64x512xf32>, vector<48x512xf32> -> vector<48x512xf32>
    %c0_4 = arith.constant 0 : index
    %c0_5 = arith.constant 0 : index
    %4 = vector.load %arg3[%c0_4, %c0_5] : memref<1x1280xf32, #tpu.memory_space<vmem>>, vector<1x512xf32>
    %5 = vector.broadcast %4 : vector<1x512xf32> to vector<48x512xf32>
    %6 = arith.addf %3, %5 : vector<48x512xf32>
    %cst_6 = arith.constant 0.000000e+00 : f32
    %7 = vector.broadcast %cst_6 : f32 to vector<48x512xf32>
    %8 = arith.maximumf %6, %7 : vector<48x512xf32>
    %c64 = arith.constant 64 : index
    %c0_7 = arith.constant 0 : index
    %9 = vector.load %arg2[%c64, %c0_7] : memref<1216x512xf32, #tpu.memory_space<vmem>>, vector<512x128xf32>
    %cst_8 = arith.constant dense<0.000000e+00> : vector<48x128xf32>
    %10 = tpu.matmul %8, %9, %cst_8 {dimension_numbers = #tpu.dot_dimension_numbers<[1], [0], [0], [1], [0, 0, 1, 1], [], []>} : vector<48x512xf32>, vector<512x128xf32>, vector<48x128xf32> -> vector<48x128xf32>
    %c0_9 = arith.constant 0 : index
    %c512 = arith.constant 512 : index
    %11 = vector.load %arg3[%c0_9, %c512] : memref<1x1280xf32, #tpu.memory_space<vmem>>, vector<1x128xf32>
    %12 = vector.broadcast %11 : vector<1x128xf32> to vector<48x128xf32>
    %13 = arith.addf %10, %12 : vector<48x128xf32>
    %cst_10 = arith.constant 0.000000e+00 : f32
    %14 = vector.broadcast %cst_10 : f32 to vector<48x128xf32>
    %15 = arith.maximumf %13, %14 : vector<48x128xf32>
    %16 = vector.shape_cast %15 : vector<48x128xf32> to vector<6x8x128xf32>
    %cst_11 = arith.constant dense<0.000000e+00> : vector<8x128xf32>
    %17 = vector.multi_reduction <add>, %16, %cst_11 [0] : vector<6x8x128xf32> to vector<8x128xf32>
    %c576 = arith.constant 576 : index
    %c0_12 = arith.constant 0 : index
    %18 = vector.load %arg2[%c576, %c0_12] : memref<1216x512xf32, #tpu.memory_space<vmem>>, vector<128x512xf32>
    %cst_13 = arith.constant dense<0.000000e+00> : vector<8x512xf32>
    %19 = tpu.matmul %17, %18, %cst_13 {dimension_numbers = #tpu.dot_dimension_numbers<[1], [0], [0], [1], [0, 0, 1, 1], [], []>} : vector<8x128xf32>, vector<128x512xf32>, vector<8x512xf32> -> vector<8x512xf32>
    %c0_14 = arith.constant 0 : index
    %c640 = arith.constant 640 : index
    %20 = vector.load %arg3[%c0_14, %c640] : memref<1x1280xf32, #tpu.memory_space<vmem>>, vector<1x512xf32>
    %21 = vector.broadcast %20 : vector<1x512xf32> to vector<8x512xf32>
    %22 = arith.addf %19, %21 : vector<8x512xf32>
    %cst_15 = arith.constant 0.000000e+00 : f32
    %23 = vector.broadcast %cst_15 : f32 to vector<8x512xf32>
    %24 = arith.maximumf %22, %23 : vector<8x512xf32>
    %c704 = arith.constant 704 : index
    %c0_16 = arith.constant 0 : index
    %25 = vector.load %arg2[%c704, %c0_16] : memref<1216x512xf32, #tpu.memory_space<vmem>>, vector<512x128xf32>
    %cst_17 = arith.constant dense<0.000000e+00> : vector<8x128xf32>
    %26 = tpu.matmul %24, %25, %cst_17 {dimension_numbers = #tpu.dot_dimension_numbers<[1], [0], [0], [1], [0, 0, 1, 1], [], []>} : vector<8x512xf32>, vector<512x128xf32>, vector<8x128xf32> -> vector<8x128xf32>
    %c0_18 = arith.constant 0 : index
    %c1152 = arith.constant 1152 : index
    %27 = vector.load %arg3[%c0_18, %c1152] : memref<1x1280xf32, #tpu.memory_space<vmem>>, vector<1x128xf32>
    %28 = vector.broadcast %27 : vector<1x128xf32> to vector<8x128xf32>
    %29 = arith.addf %26, %28 : vector<8x128xf32>
    %c0_19 = arith.constant 0 : index
    %c0_20 = arith.constant 0 : index
    %30 = vector.load %arg4[%c0_19, %c0_20] : memref<8x128xf32, #tpu.memory_space<vmem>>, vector<8x128xf32>
    tpu.vector_store %arg4[%c0_19, %c0_20], %29 {strides = array<i32>} : memref<8x128xf32, #tpu.memory_space<vmem>>, vector<8x128xf32>,
    return
  }
  func.func @transform_0(%arg0: i32) -> (i32, i32, i32) {
    %c0_i32 = arith.constant 0 : i32
    %c0_i32_0 = arith.constant 0 : i32
    %c0_i32_1 = arith.constant 0 : i32
    return %c0_i32, %arg0, %c0_i32_0 : i32, i32, i32
  }
  func.func @transform_1(%arg0: i32) -> (i32, i32) {
    %c0_i32 = arith.constant 0 : i32
    %c0_i32_0 = arith.constant 0 : i32
    %c0_i32_1 = arith.constant 0 : i32
    return %c0_i32, %c0_i32_0 : i32, i32
  }
  func.func @transform_2(%arg0: i32) -> (i32, i32) {
    %c0_i32 = arith.constant 0 : i32
    %c0_i32_0 = arith.constant 0 : i32
    %c0_i32_1 = arith.constant 0 : i32
    return %c0_i32, %c0_i32_0 : i32, i32
  }
  func.func @transform_3(%arg0: i32) -> (i32, i32) {
    %c0_i32 = arith.constant 0 : i32
    %c0_i32_0 = arith.constant 0 : i32
    return %arg0, %c0_i32 : i32, i32
  }
}

</mosaic_0001>

<bundles_post_ra>
// kernel: tpu_custom_call.1
= control target key start
LH: loop header
LB: loop body
LE: loop exit
PB: predicated region body
PF: predicated region fallthrough
CT: control target
= control target key end

     0   :  { %8 = vsyncpa [#allocation3], 0  ;;  %s1759_s0 = inlined_call_operand.hbm [shape: f32[6,8,64], index: 0, kind: input, shape index: {}]   ;;  %s1760_s1 = inlined_call_operand.hbm [shape: f32[1216,512], index: 1, kind: input, shape index: {}]   ;;  %s1761_s2 = inlined_call_operand.hbm [shape: f32[1,1280], index: 2, kind: input, shape index: {}]   ;;  %s1762_s3 = inlined_call_operand.hbm [shape: f32[8,128], index: 3, kind: output, shape index: {}]  }
   0x1   :  { %9 = vsyncpa [#allocation6], 0 }
   0x2   :  { %10 = vsyncpa [#allocation4], 0  ;;  %s1602_s12 = smov [#allocation5]   ;;  %s1508_s16 = scalar_lea.hbm %s1760_s1, 77824 }
   0x3   :  { %s28_s13 = sshll.u32 %s1602_s12, 4  ;;  %p1509_p0 = scmp.ne.s32.totalorder %s1760_s1, %s1508_s16  ;;  %s29_s13 = int_to_ptr.vmem [resolvable:$true] %s28_s13 }
   0x4   :  { %p1512_p1 = scmp.lt.u32.totalorder %s1508_s16, %s1760_s1 }
   0x6   :  { %p1514_p2 = pnand %p1512_p1, %p1509_p0 }
   0x8   :  { %1517 = shalt.err (!%p1514_p2)
}
   0x9   :  { %s1518_s21 = scalar_lea.vmem %s29_s13, 77824  ;;  %p1523_p4 = scmp.lt.s32.totalorder %s29_s13, %s29_s13 }
   0xa   :  { %p1519_p3 = scmp.ne.s32.totalorder %s29_s13, %s1518_s21  ;;  %p1524_p5 = scmp.lt.s32.totalorder %s1518_s21, %s1518_s21 }
   0xc   :  { %p1525_p6 = por %p1524_p5, %p1523_p4 }
   0xe   :  { %p1526_p7 = pnand %p1525_p6, %p1519_p3 }
  0x10   :  { %1529 = shalt.err (!%p1526_p7)
}
  0x11   :  { %s1603_s22 = smov 512   ;;  %s1604_s23 = smov 32  }
  0x12   :  { %34 = dma.hbm_to_vmem [thread:$0]  %s1760_s1, 77824, %s29_s13, [#allocation6], %s1603_s22, %s1603_s22, %s1604_s23  }
  0x13   :  { %s1605_s26 = smov [#allocation2]   ;;  %s1530_s30 = scalar_lea.hbm %s1759_s0, 768 }
  0x14   :  { %s16_s27 = sshll.u32 %s1605_s26, 4  ;;  %p1531_p8 = scmp.ne.s32.totalorder %s1759_s0, %s1530_s30  ;;  %s17_s27 = int_to_ptr.vmem [resolvable:$true] %s16_s27 }
  0x15   :  { %p1534_p9 = scmp.lt.u32.totalorder %s1530_s30, %s1759_s0 }
  0x17   :  { %p1536_p10 = pnand %p1534_p9, %p1531_p8 }
  0x19   :  { %1539 = shalt.err (!%p1536_p10)
}
  0x1a   :  { %s1540_s8 = scalar_lea.vmem %s17_s27, 768  ;;  %p1545_p12 = scmp.lt.s32.totalorder %s17_s27, %s17_s27 }
  0x1b   :  { %p1541_p11 = scmp.ne.s32.totalorder %s17_s27, %s1540_s8  ;;  %p1546_p13 = scmp.lt.s32.totalorder %s1540_s8, %s1540_s8 }
  0x1d   :  { %p1547_p0 = por %p1546_p13, %p1545_p12 }
  0x1f   :  { %p1548_p1 = pnand %p1547_p0, %p1541_p11 }
  0x21   :  { %1551 = shalt.err (!%p1548_p1)
}
  0x22   :  { %s1606_s1 = smov 128   ;;  %s1607_s9 = smov 8  }
  0x23   :  { %22 = dma.hbm_to_vmem [thread:$0]  %s1759_s0, 768, %s17_s27, [#allocation3], %s1606_s1, %s1606_s1, %s1607_s9  }
  0x24   :  { %s1608_s12 = smov [#allocation7]   ;;  %s1552_s16 = scalar_lea.hbm %s1761_s2, 160 }
  0x25   :  { %s41_s13 = sshll.u32 %s1608_s12, 4  ;;  %p1553_p2 = scmp.ne.s32.totalorder %s1761_s2, %s1552_s16  ;;  %s42_s13 = int_to_ptr.vmem [resolvable:$true] %s41_s13 }
  0x26   :  { %p1556_p3 = scmp.lt.u32.totalorder %s1552_s16, %s1761_s2 }
  0x28   :  { %p1558_p4 = pnand %p1556_p3, %p1553_p2 }
  0x2a   :  { %1561 = shalt.err (!%p1558_p4)
}
  0x2b   :  { %s1562_s21 = scalar_lea.vmem %s42_s13, 160  ;;  %p1567_p6 = scmp.lt.s32.totalorder %s42_s13, %s42_s13 }
  0x2c   :  { %p1563_p5 = scmp.ne.s32.totalorder %s42_s13, %s1562_s21  ;;  %p1568_p7 = scmp.lt.s32.totalorder %s1562_s21, %s1562_s21 }
  0x2e   :  { %p1569_p8 = por %p1568_p7, %p1567_p6 }
  0x30   :  { %p1570_p9 = pnand %p1569_p8, %p1563_p5 }
  0x32   :  { %1573 = shalt.err (!%p1570_p9)
}
  0x33   :  { %44 = dma.hbm_to_vmem [thread:$0]  %s1761_s2, 160, %s42_s13, [#allocation6]  }
  0x34   :  { %1596 = dma.done.wait [#allocation3], 768  }
  0x35   :  { %1597 = vsyncadd [#allocation3], 4294966528 }
  0x36   :  { %1598 = dma.done.wait [#allocation6], 77984  }
  0x37   :  { %1599 = vsyncadd [#allocation6], 4294889312  ;;  %v1609_v0 = vmov 0.0   ;;  %v61_v1 = vld [vmem:[#allocation5 + $0x8] sm:$0xff]  ;;  %v63_v3 = vld [vmem:[#allocation5 + $0x18] sm:$0xff]  ;;  %vm114_vm0 = vcmask 523264  }
  0x38   :  { %197 = vmatprep.mubr.f32.mxu0 %v1609_v0  ;;  %298 = vmatprep.mubr.f32.mxu1 %v1609_v0  ;;  %v65_v2 = vld [vmem:[#allocation5 + $0x28] sm:$0xff]  ;;  %v67_v5 = vld [vmem:[#allocation5 + $0x38] sm:$0xff]  ;;  %v60_v6 = vld [vmem:[#allocation5] sm:$0xff]  ;;  %s1610_s2 = smov [#allocation8]  }
  0x39   :  { %v1275_v4 = vpack.c.bf16 %v65_v2, %v61_v1  ;;  %v64_v7 = vld [vmem:[#allocation5 + $0x20] sm:$0xff]  ;;  %v1291_v8 = vpack.c.bf16 %v67_v5, %v63_v3  ;;  %v62_v10 = vld [vmem:[#allocation5 + $0x10] sm:$0xff]  ;;  %v69_v12 = vld [vmem:[#allocation5 + $0x48] sm:$0xff]  ;;  %s1081_s23 = sshll.u32 %s1610_s2, 4  ;;  %s1082_s23 = int_to_ptr.vmem [resolvable:$true] %s1081_s23 }
  0x3a   :  { %v1277_v9 = vpack.c.bf16 %v64_v7, %v60_v6  ;;  %v66_v11 = vld [vmem:[#allocation5 + $0x30] sm:$0xff]  ;;  %v73_v14 = vld [vmem:[#allocation5 + $0x68] sm:$0xff]  ;;  %v71_v15 = vld [vmem:[#allocation5 + $0x58] sm:$0xff]  ;;  %s1574_s24 = scalar_lea.vmem %s1082_s23, 128  ;;  %p1579_p11 = scmp.lt.s32.totalorder %s1082_s23, %s1082_s23 }
  0x3b   :  { %1276 = vmatprep.subr.bf16.mxu0 %v1275_v4  ;;  %v1293_v13 = vpack.c.bf16 %v66_v11, %v62_v10  ;;  %v75_v16 = vld [vmem:[#allocation5 + $0x78] sm:$0xff]  ;;  %1292 = vmatprep.subr.bf16.mxu1 %v1291_v8  ;;  %v1279_v17 = vpack.c.bf16 %v73_v14, %v69_v12  ;;  %v68_v19 = vld [vmem:[#allocation5 + $0x40] sm:$0xff]  ;;  %v70_v21 = vld [vmem:[#allocation5 + $0x50] sm:$0xff]  ;;  %p1575_p10 = scmp.ne.s32.totalorder %s1082_s23, %s1574_s24  ;;  %p1580_p12 = scmp.lt.s32.totalorder %s1574_s24, %s1574_s24 }
  0x3c   :  { %1278 = vmatpush1.bf16.msra.mxu0 %v1277_v9  ;;  %v1295_v18 = vpack.c.bf16 %v75_v16, %v71_v15  ;;  %v72_v20 = vld [vmem:[#allocation5 + $0x60] sm:$0xff]  ;;  %v74_v23 = vld [vmem:[#allocation5 + $0x70] sm:$0xff]  ;;  %v77_v24 = vld [vmem:[#allocation5 + $0x88] sm:$0xff] }
  0x3d   :  { %1294 = vmatpush1.bf16.msra.mxu1 %v1293_v13  ;;  %v1281_v22 = vpack.c.bf16 %v72_v20, %v68_v19  ;;  %v81_v25 = vld [vmem:[#allocation5 + $0xa8] sm:$0xff]  ;;  %1280 = vmatprep.subr.bf16.mxu0 %v1279_v17  ;;  %v1297_v26 = vpack.c.bf16 %v74_v23, %v70_v21  ;;  %v79_v28 = vld [vmem:[#allocation5 + $0x98] sm:$0xff]  ;;  %v76_v30 = vld [vmem:[#allocation5 + $0x80] sm:$0xff]  ;;  %p1581_p13 = por %p1580_p12, %p1579_p11 }
  0x3e   :  { %1296 = vmatprep.subr.bf16.mxu1 %v1295_v18  ;;  %v1283_v27 = vpack.c.bf16 %v81_v25, %v77_v24  ;;  %v83_v29 = vld [vmem:[#allocation5 + $0xb8] sm:$0xff]  ;;  %v80_v32 = vld [vmem:[#allocation5 + $0xa0] sm:$0xff]  ;;  %v78_v33 = vld [vmem:[#allocation5 + $0x90] sm:$0xff] }
  0x3f   :  { %v1299_v31 = vpack.c.bf16 %v83_v29, %v79_v28  ;;  %v82_v34 = vld [vmem:[#allocation5 + $0xb0] sm:$0xff]  ;;  %v1285_v35 = vpack.c.bf16 %v80_v32, %v76_v30  ;;  %v85_v36 = vld [vmem:[#allocation5 + $0xc8] sm:$0xff]  ;;  %v87_v38 = vld [vmem:[#allocation5 + $0xd8] sm:$0xff]  ;;  %p1582_p0 = pnand %p1581_p13, %p1575_p10 }
  0x40   :  { %1282 = vmatpush1.bf16.msra.mxu0 %v1281_v22  ;;  %v89_v37 = vld [vmem:[#allocation5 + $0xe8] sm:$0xff]  ;;  %v1301_v39 = vpack.c.bf16 %v82_v34, %v78_v33  ;;  %v91_v41 = vld [vmem:[#allocation5 + $0xf8] sm:$0xff]  ;;  %v84_v42 = vld [vmem:[#allocation5 + $0xc0] sm:$0xff] }
  0x41   :  { %1298 = vmatpush1.bf16.msra.mxu1 %v1297_v26  ;;  %1284 = vmatprep.subr.bf16.mxu0 %v1283_v27  ;;  %v1287_v40 = vpack.c.bf16 %v89_v37, %v85_v36  ;;  %v88_v43 = vld [vmem:[#allocation5 + $0xe0] sm:$0xff]  ;;  %v1303_v44 = vpack.c.bf16 %v91_v41, %v87_v38  ;;  %v86_v45 = vld [vmem:[#allocation5 + $0xd0] sm:$0xff]  ;;  %v55_v11 = vld [vmem:[#allocation2 + $0x8] sm:$0xff] }
  0x42   :  { %1300 = vmatprep.subr.bf16.mxu1 %v1299_v31  ;;  %v90_v46 = vld [vmem:[#allocation5 + $0xf0] sm:$0xff]  ;;  %v1289_v47 = vpack.c.bf16 %v88_v43, %v84_v42  ;;  %v375_v48 = vld [vmem:[#allocation5 + $0x300] sm:$0xff]  ;;  %v57_v37 = vld [vmem:[#allocation2 + $0x18] sm:$0xff] }
  0x43   :  { %v1305_v49 = vpack.c.bf16 %v90_v46, %v86_v45  ;;  %v376_v50 = vld [vmem:[#allocation5 + $0x320] sm:$0xff]  ;;  %v54_v61 = vld [vmem:[#allocation2] sm:$0xff] }
  0x44   :  { %1286 = vmatpush1.bf16.msra.mxu0 %v1285_v35  ;;  %v407_v51 = vld [vmem:[#allocation5 + $0x700] sm:$0xff]  ;;  %v1307_v53 = vpack.c.bf16 %v376_v50, %v375_v48  ;;  %v58_v50 = vld [vmem:[#allocation2 + $0x20] sm:$0xff] }
  0x45   :  { %1302 = vmatpush1.bf16.msra.mxu1 %v1301_v39  ;;  %1288 = vmatprep.subr.bf16.mxu0 %v1287_v40  ;;  %v408_v52 = vld [vmem:[#allocation5 + $0x720] sm:$0xff] }
  0x46   :  { %1304 = vmatprep.subr.bf16.mxu1 %v1303_v44  ;;  %v1339_v54 = vpack.c.bf16 %v408_v52, %v407_v51  ;;  %v359_v55 = vld [vmem:[#allocation5 + $0x100] sm:$0xff] }
  0x47   :  { %v360_v56 = vld [vmem:[#allocation5 + $0x120] sm:$0xff] }
  0x48   :  { %v391_v57 = vld [vmem:[#allocation5 + $0x500] sm:$0xff]  ;;  %1290 = vmatpush1.bf16.msra.mxu0 %v1289_v47  ;;  %v1309_v1 = vpack.c.bf16 %v360_v56, %v359_v55 }
  0x49   :  { %v392_v58 = vld [vmem:[#allocation5 + $0x520] sm:$0xff]  ;;  %1306 = vmatpush1.bf16.msra.mxu1 %v1305_v49  ;;  %1308 = vmatprep.subr.bf16.mxu0 %v1307_v53 }
  0x4a   :  { %v377_v59 = vld [vmem:[#allocation5 + $0x340] sm:$0xff]  ;;  %1340 = vmatprep.subr.bf16.mxu1 %v1339_v54  ;;  %v1341_v2 = vpack.c.bf16 %v392_v58, %v391_v57 }
  0x4b   :  { %v378_v60 = vld [vmem:[#allocation5 + $0x360] sm:$0xff]  ;;  %1091 = vmatmul.mubr.msk.f32.vlgmr.msra.gmra.mrb[0].mxu0 %vm114_vm0, %v54_v61 }
  0x4c   :  { %v409_v62 = vld [vmem:[#allocation5 + $0x740] sm:$0xff]  ;;  %v1311_v3 = vpack.c.bf16 %v378_v60, %v377_v59  ;;  %1097 = vmatmul.mubr.msk.f32.vlgmr.msra.gmra.mrb[0].mxu1 %vm114_vm0, %v54_v61  ;;  %203 = vmatprep.mubr.f32.mxu0 %v1609_v0 }
  0x4d   :  { %v410_v63 = vld [vmem:[#allocation5 + $0x760] sm:$0xff]  ;;  %304 = vmatprep.mubr.f32.mxu1 %v1609_v0  ;;  %1310 = vmatpush3.bf16.msra.mxu0 %v1309_v1 }
  0x4e   :  { %v361_v4 = vld [vmem:[#allocation5 + $0x140] sm:$0xff]  ;;  %v1343_v7 = vpack.c.bf16 %v410_v63, %v409_v62  ;;  %1342 = vmatpush3.bf16.msra.mxu1 %v1341_v2  ;;  %1312 = vmatprep.subr.bf16.mxu0 %v1311_v3  ;;  %v59_v63 = vld [vmem:[#allocation2 + $0x28] sm:$0xff] }
  0x4f   :  { %v362_v5 = vld [vmem:[#allocation5 + $0x160] sm:$0xff]  ;;  %1092 = vmatmul.mubr.msk.f32.gmra.mrb[2].mxu0 %vm114_vm0, %v55_v11 }
  0x50   :  { %v393_v6 = vld [vmem:[#allocation5 + $0x540] sm:$0xff]  ;;  %v1313_v14 = vpack.c.bf16 %v362_v5, %v361_v4  ;;  %1344 = vmatprep.subr.bf16.mxu1 %v1343_v7  ;;  %1098 = vmatmul.mubr.msk.f32.gmra.mrb[2].mxu1 %vm114_vm0, %v55_v11 }
  0x51   :  { %v394_v8 = vld [vmem:[#allocation5 + $0x560] sm:$0xff]  ;;  %209 = vmatprep.mubr.f32.mxu0 %v1609_v0  ;;  %310 = vmatprep.mubr.f32.mxu1 %v1609_v0 }
  0x52   :  { %v379_v9 = vld [vmem:[#allocation5 + $0x380] sm:$0xff]  ;;  %v1345_v15 = vpack.c.bf16 %v394_v8, %v393_v6  ;;  %1314 = vmatpush3.bf16.msra.mxu0 %v1313_v14 }
  0x53   :  { %v380_v10 = vld [vmem:[#allocation5 + $0x3a0] sm:$0xff] }
  0x54   :  { %v411_v12 = vld [vmem:[#allocation5 + $0x780] sm:$0xff]  ;;  %v1315_v16 = vpack.c.bf16 %v380_v10, %v379_v9  ;;  %1346 = vmatpush3.bf16.msra.mxu1 %v1345_v15 }
  0x55   :  { %v412_v13 = vld [vmem:[#allocation5 + $0x7a0] sm:$0xff] }
  0x56   :  { %v363_v17 = vld [vmem:[#allocation5 + $0x180] sm:$0xff]  ;;  %v1347_v20 = vpack.c.bf16 %v412_v13, %v411_v12  ;;  %1316 = vmatprep.subr.bf16.mxu0 %v1315_v16 }
  0x57   :  { %v364_v18 = vld [vmem:[#allocation5 + $0x1a0] sm:$0xff] }
  0x58   :  { %v395_v19 = vld [vmem:[#allocation5 + $0x580] sm:$0xff]  ;;  %v1317_v27 = vpack.c.bf16 %v364_v18, %v363_v17  ;;  %1348 = vmatprep.subr.bf16.mxu1 %v1347_v20 }
  0x59   :  { %v396_v21 = vld [vmem:[#allocation5 + $0x5a0] sm:$0xff] }
  0x5a   :  { %v381_v22 = vld [vmem:[#allocation5 + $0x3c0] sm:$0xff]  ;;  %v1349_v28 = vpack.c.bf16 %v396_v21, %v395_v19  ;;  %1318 = vmatpush3.bf16.msra.mxu0 %v1317_v27 }
  0x5b   :  { %v382_v23 = vld [vmem:[#allocation5 + $0x3e0] sm:$0xff] }
  0x5c   :  { %v56_v24 = vld [vmem:[#allocation2 + $0x10] sm:$0xff]  ;;  %v1319_v29 = vpack.c.bf16 %v382_v23, %v381_v22  ;;  %1350 = vmatpush3.bf16.msra.mxu1 %v1349_v28 }
  0x5d   :  { %v413_v25 = vld [vmem:[#allocation5 + $0x7c0] sm:$0xff]  ;;  %1093 = vmatmul.mubr.msk.f32.gmra.mrb[4].mxu0 %vm114_vm0, %v56_v24  ;;  %1099 = vmatmul.mubr.msk.f32.gmra.mrb[4].mxu1 %vm114_vm0, %v56_v24 }
  0x5e   :  { %v414_v26 = vld [vmem:[#allocation5 + $0x7e0] sm:$0xff]  ;;  %215 = vmatprep.mubr.f32.mxu0 %v1609_v0  ;;  %316 = vmatprep.mubr.f32.mxu1 %v1609_v0 }
  0x5f   :  { %v365_v30 = vld [vmem:[#allocation5 + $0x1c0] sm:$0xff]  ;;  %v1351_v33 = vpack.c.bf16 %v414_v26, %v413_v25  ;;  %1320 = vmatprep.subr.bf16.mxu0 %v1319_v29  ;;  %v94_v25 = vlaneseq }
  0x60   :  { %v366_v31 = vld [vmem:[#allocation5 + $0x1e0] sm:$0xff] }
  0x61   :  { %v397_v32 = vld [vmem:[#allocation5 + $0x5c0] sm:$0xff]  ;;  %v1321_v40 = vpack.c.bf16 %v366_v31, %v365_v30  ;;  %1094 = vmatmul.mubr.msk.f32.gmra.mrb[6].mxu0 %vm114_vm0, %v57_v37  ;;  %1352 = vmatprep.subr.bf16.mxu1 %v1351_v33  ;;  %v1691_v26 = vshrl.u32 %v94_v25, 7 }
  0x62   :  { %v398_v34 = vld [vmem:[#allocation5 + $0x5e0] sm:$0xff]  ;;  %1100 = vmatmul.mubr.msk.f32.gmra.mrb[6].mxu1 %vm114_vm0, %v57_v37  ;;  %221 = vmatprep.mubr.f32.mxu0 %v1609_v0 }
  0x63   :  { %v383_v35 = vld [vmem:[#allocation5 + $0x400] sm:$0xff]  ;;  %v1353_v41 = vpack.c.bf16 %v398_v34, %v397_v32  ;;  %322 = vmatprep.mubr.f32.mxu1 %v1609_v0  ;;  %1322 = vmatpush3.bf16.msra.mxu0 %v1321_v40  ;;  %v96_v27 = vsub.s32 0, %v1691_v26  ;;  %v104_v29 = vsub.s32 2, %v1691_v26  ;;  %v100_v30 = vsub.s32 1, %v1691_v26 }
  0x64   :  { %v384_v36 = vld [vmem:[#allocation5 + $0x420] sm:$0xff]  ;;  %v108_v31 = vsub.s32 3, %v1691_v26  ;;  %v1104_v26 = vld [vmem:[#allocation7 + $0x9] ss:$0 sm:$0xff] }
  0x65   :  { %v415_v38 = vld [vmem:[#allocation5 + $0x800] sm:$0xff]  ;;  %v1323_v42 = vpack.c.bf16 %v384_v36, %v383_v35  ;;  %1354 = vmatpush3.bf16.msra.mxu1 %v1353_v41  ;;  %1095 = vmatmul.mubr.msk.f32.gmra.mrb[8].mxu0 %vm114_vm0, %v58_v50 }
  0x66   :  { %v416_v39 = vld [vmem:[#allocation5 + $0x820] sm:$0xff]  ;;  %1101 = vmatmul.mubr.msk.f32.gmra.mrb[8].mxu1 %vm114_vm0, %v58_v50  ;;  %227 = vmatprep.mubr.f32.mxu0 %v1609_v0 }
  0x67   :  { %v367_v43 = vld [vmem:[#allocation5 + $0x200] sm:$0xff]  ;;  %v1355_v46 = vpack.c.bf16 %v416_v39, %v415_v38  ;;  %1324 = vmatprep.subr.bf16.mxu0 %v1323_v42  ;;  %328 = vmatprep.mubr.f32.mxu1 %v1609_v0 }
  0x68   :  { %v368_v44 = vld [vmem:[#allocation5 + $0x220] sm:$0xff] }
  0x69   :  { %v399_v45 = vld [vmem:[#allocation5 + $0x600] sm:$0xff]  ;;  %v1325_v53 = vpack.c.bf16 %v368_v44, %v367_v43  ;;  %1356 = vmatprep.subr.bf16.mxu1 %v1355_v46  ;;  %1096 = vmatmul.mubr.msk.f32.gmra.mrb[10].mxu0 %vm114_vm0, %v59_v63 }
  0x6a   :  { %v400_v47 = vld [vmem:[#allocation5 + $0x620] sm:$0xff]  ;;  %1102 = vmatmul.mubr.msk.f32.gmra.mrb[10].mxu1 %vm114_vm0, %v59_v63 }
  0x6b   :  { %v385_v48 = vld [vmem:[#allocation5 + $0x440] sm:$0xff]  ;;  %v1357_v54 = vpack.c.bf16 %v400_v47, %v399_v45  ;;  %1326 = vmatpush3.bf16.msra.mxu0 %v1325_v53 }
  0x6c   :  { %v386_v49 = vld [vmem:[#allocation5 + $0x460] sm:$0xff] }
  0x6d   :  { %v417_v51 = vld [vmem:[#allocation5 + $0x840] sm:$0xff]  ;;  %v1327_v55 = vpack.c.bf16 %v386_v49, %v385_v48  ;;  %1358 = vmatpush3.bf16.msra.mxu1 %v1357_v54 }
  0x6e   :  { %v418_v52 = vld [vmem:[#allocation5 + $0x860] sm:$0xff] }
  0x6f   :  { %v369_v56 = vld [vmem:[#allocation5 + $0x240] sm:$0xff]  ;;  %v1359_v59 = vpack.c.bf16 %v418_v52, %v417_v51  ;;  %1328 = vmatprep.subr.bf16.mxu0 %v1327_v55 }
  0x70   :  { %v370_v57 = vld [vmem:[#allocation5 + $0x260] sm:$0xff] }
  0x71   :  { %v401_v58 = vld [vmem:[#allocation5 + $0x640] sm:$0xff]  ;;  %v1329_v3 = vpack.c.bf16 %v370_v57, %v369_v56  ;;  %1360 = vmatprep.subr.bf16.mxu1 %v1359_v59 }
  0x72   :  { %v402_v60 = vld [vmem:[#allocation5 + $0x660] sm:$0xff] }
  0x73   :  { %v387_v61 = vld [vmem:[#allocation5 + $0x480] sm:$0xff]  ;;  %v1361_v4 = vpack.c.bf16 %v402_v60, %v401_v58  ;;  %1330 = vmatpush3.bf16.msra.mxu0 %v1329_v3 }
  0x74   :  { %v388_v62 = vld [vmem:[#allocation5 + $0x4a0] sm:$0xff] }
  0x75   :  { %v419_v1 = vld [vmem:[#allocation5 + $0x880] sm:$0xff]  ;;  %v1331_v5 = vpack.c.bf16 %v388_v62, %v387_v61  ;;  %1362 = vmatpush3.bf16.msra.mxu1 %v1361_v4 }
  0x76   :  { %v420_v2 = vld [vmem:[#allocation5 + $0x8a0] sm:$0xff] }
  0x77   :  { %v1363_v6 = vpack.c.bf16 %v420_v2, %v419_v1  ;;  %1332 = vmatprep.subr.bf16.mxu0 %v1331_v5  ;;  %v371_v7 = vld [vmem:[#allocation5 + $0x280] sm:$0xff] }
  0x78   :  { %v372_v8 = vld [vmem:[#allocation5 + $0x2a0] sm:$0xff] }
  0x79   :  { %1364 = vmatprep.subr.bf16.mxu1 %v1363_v6  ;;  %v403_v9 = vld [vmem:[#allocation5 + $0x680] sm:$0xff]  ;;  %v1333_v10 = vpack.c.bf16 %v372_v8, %v371_v7 }
  0x7a   :  { %v404_v11 = vld [vmem:[#allocation5 + $0x6a0] sm:$0xff] }
  0x7b   :  { %v1365_v12 = vpack.c.bf16 %v404_v11, %v403_v9  ;;  %1334 = vmatpush3.bf16.msra.mxu0 %v1333_v10  ;;  %v389_v13 = vld [vmem:[#allocation5 + $0x4c0] sm:$0xff] }
  0x7c   :  { %v390_v14 = vld [vmem:[#allocation5 + $0x4e0] sm:$0xff] }
  0x7d   :  { %v421_v15 = vld [vmem:[#allocation5 + $0x8c0] sm:$0xff]  ;;  %1366 = vmatpush3.bf16.msra.mxu1 %v1365_v12  ;;  %v1335_v16 = vpack.c.bf16 %v390_v14, %v389_v13 }
  0x7e   :  { %v422_v17 = vld [vmem:[#allocation5 + $0x8e0] sm:$0xff] }
  0x7f   :  { %v373_v18 = vld [vmem:[#allocation5 + $0x2c0] sm:$0xff]  ;;  %v1367_v20 = vpack.c.bf16 %v422_v17, %v421_v15  ;;  %1336 = vmatprep.subr.bf16.mxu0 %v1335_v16 }
  0x80   :  { %v374_v19 = vld [vmem:[#allocation5 + $0x2e0] sm:$0xff] }
  0x81   :  { %v1337_v21 = vpack.c.bf16 %v374_v19, %v373_v18  ;;  %v405_v22 = vld [vmem:[#allocation5 + $0x6c0] sm:$0xff]  ;;  %1368 = vmatprep.subr.bf16.mxu1 %v1367_v20 }
  0x82   :  { %v406_v23 = vld [vmem:[#allocation5 + $0x6e0] sm:$0xff] }
  0x83   :  { %v1369_v24 = vpack.c.bf16 %v406_v23, %v405_v22  ;;  %1338 = vmatpush3.bf16.msra.mxu0 %v1337_v21  ;;  %v92_v28 = vld [vmem:[#allocation7] sm:$0xf] }
  0x84   :  { %v1699_v32 = vrot.slane %v92_v28, %v96_v27  ;;  %v1703_v33 = vrot.slane %v92_v28, %v104_v29  ;;  %v1707_v34 = vrot.slane %v92_v28, %v100_v30  ;;  %v1711_v35 = vrot.slane %v92_v28, %v108_v31 }
  0x85   :  { %1370 = vmatpush3.bf16.msra.mxu1 %v1369_v24 }
 0x11e   :  { %v199_v36 = vpop.f32.mrb[0].mxu0 }
 0x11f   :  { %v200_v37 = vadd.f32 %v199_v36, %v1699_v32  ;;  %v300_v38 = vpop.f32.mrb[0].mxu1  ;;  %v201_v39 = vpop.f32.mrb[1].mxu0 }
 0x120   :  { %v301_v40 = vadd.f32 %v300_v38, %v1703_v33  ;;  %v202_v41 = vadd.f32 %v201_v39, %v1707_v34  ;;  %v302_v42 = vpop.f32.mrb[1].mxu1 }
 0x121   :  { %v303_v43 = vadd.f32 %v302_v42, %v1711_v35  ;;  %v335_v47 = vmax.f32 %v200_v37, 0.0 }
 0x122   :  { %v337_v44 = vmax.f32 %v301_v40, 0.0  ;;  %v336_v45 = vmax.f32 %v202_v41, 0.0  ;;  %v205_v46 = vpop.f32.mrb[2].mxu0 }
 0x123   :  { %v338_v48 = vmax.f32 %v303_v43, 0.0  ;;  %v206_v49 = vadd.f32 %v205_v46, %v1699_v32  ;;  %v306_v50 = vpop.f32.mrb[2].mxu1  ;;  %v207_v51 = vpop.f32.mrb[3].mxu0 }
 0x124   :  { %v307_v52 = vadd.f32 %v306_v50, %v1703_v33  ;;  %v208_v53 = vadd.f32 %v207_v51, %v1707_v34  ;;  %v308_v54 = vpop.f32.mrb[3].mxu1  ;;  %494 = vmatprep.mubr.f32.mxu0 %v336_v45 }
 0x125   :  { %v309_v55 = vadd.f32 %v308_v54, %v1711_v35  ;;  %589 = vmatprep.mubr.f32.mxu1 %v338_v48  ;;  %495 = vmatmul.mubr.f32.vlgmr.msra.gmra.mrb[12].mxu0 %v335_v47  ;;  %v339_v59 = vmax.f32 %v206_v49, 0.0 }
 0x126   :  { %v341_v56 = vmax.f32 %v307_v52, 0.0  ;;  %v340_v57 = vmax.f32 %v208_v53, 0.0  ;;  %590 = vmatmul.mubr.f32.vlgmr.msra.gmra.mrb[12].mxu1 %v337_v44 }
 0x127   :  { %v342_v60 = vmax.f32 %v309_v55, 0.0  ;;  %v631_v55 = vld [vmem:[#allocation5 + $0x900] sm:$0xff] }
 0x128   :  { %499 = vmatprep.mubr.f32.mxu0 %v340_v57 }
 0x129   :  { %594 = vmatprep.mubr.f32.mxu1 %v342_v60  ;;  %500 = vmatmul.mubr.f32.gmra.mrb[14].mxu0 %v339_v59  ;;  %v633_v59 = vld [vmem:[#allocation5 + $0x910] sm:$0xff] }
 0x12a   :  { %595 = vmatmul.mubr.f32.gmra.mrb[14].mxu1 %v341_v56  ;;  %v635_v56 = vld [vmem:[#allocation5 + $0x920] sm:$0xff]  ;;  %v637_v60 = vld [vmem:[#allocation5 + $0x930] sm:$0xff] }
 0x130   :  { %v211_v58 = vpop.f32.mrb[4].mxu0  ;;  %v312_v62 = vpop.f32.mrb[4].mxu1 }
 0x131   :  { %v212_v61 = vadd.f32 %v211_v58, %v1699_v32  ;;  %v213_v63 = vpop.f32.mrb[5].mxu0  ;;  %v313_v1 = vadd.f32 %v312_v62, %v1703_v33  ;;  %v314_v3 = vpop.f32.mrb[5].mxu1  ;;  %v1373_v58 = vpack.c.bf16 %v635_v56, %v631_v55  ;;  %v640_v62 = vld [vmem:[#allocation5 + $0x948] sm:$0xff]  ;;  %v678_v55 = vld [vmem:[#allocation5 + $0xa78] sm:$0xff]  ;;  %v671_v56 = vld [vmem:[#allocation5 + $0xa40] sm:$0xff] }
 0x132   :  { %v214_v2 = vadd.f32 %v213_v63, %v1707_v34  ;;  %v315_v4 = vadd.f32 %v314_v3, %v1711_v35  ;;  %v644_v63 = vld [vmem:[#allocation5 + $0x968] sm:$0xff]  ;;  %v639_v3 = vld [vmem:[#allocation5 + $0x940] sm:$0xff] }
 0x133   :  { %v345_v5 = vmax.f32 %v313_v1, 0.0  ;;  %v343_v8 = vmax.f32 %v212_v61, 0.0  ;;  %v1405_v61 = vpack.c.bf16 %v637_v60, %v633_v59  ;;  %v642_v1 = vld [vmem:[#allocation5 + $0x958] sm:$0xff]  ;;  %v673_v60 = vld [vmem:[#allocation5 + $0xa50] sm:$0xff] }
 0x134   :  { %v344_v6 = vmax.f32 %v214_v2, 0.0  ;;  %v217_v7 = vpop.f32.mrb[6].mxu0  ;;  %v346_v9 = vmax.f32 %v315_v4, 0.0  ;;  %v646_v2 = vld [vmem:[#allocation5 + $0x978] sm:$0xff]  ;;  %v643_v4 = vld [vmem:[#allocation5 + $0x960] sm:$0xff] }
 0x135   :  { %v218_v10 = vadd.f32 %v217_v7, %v1699_v32  ;;  %v318_v11 = vpop.f32.mrb[6].mxu1  ;;  %v219_v12 = vpop.f32.mrb[7].mxu0  ;;  %v641_v7 = vld [vmem:[#allocation5 + $0x950] sm:$0xff] }
 0x136   :  { %v319_v13 = vadd.f32 %v318_v11, %v1703_v33  ;;  %v220_v14 = vadd.f32 %v219_v12, %v1707_v34  ;;  %v320_v15 = vpop.f32.mrb[7].mxu1  ;;  %504 = vmatprep.mubr.f32.mxu0 %v344_v6  ;;  %599 = vmatprep.mubr.f32.mxu1 %v346_v9  ;;  %v1377_v6 = vpack.c.bf16 %v643_v4, %v639_v3  ;;  %v652_v11 = vld [vmem:[#allocation5 + $0x9a8] sm:$0xff]  ;;  %v650_v12 = vld [vmem:[#allocation5 + $0x998] sm:$0xff]  ;;  %v679_v4 = vld [vmem:[#allocation5 + $0xa80] sm:$0xff] }
 0x137   :  { %v321_v16 = vadd.f32 %v320_v15, %v1711_v35  ;;  %505 = vmatmul.mubr.f32.gmra.mrb[16].mxu0 %v343_v8  ;;  %600 = vmatmul.mubr.f32.gmra.mrb[16].mxu1 %v345_v5  ;;  %v347_v20 = vmax.f32 %v218_v10, 0.0  ;;  %v1407_v5 = vpack.c.bf16 %v646_v2, %v642_v1  ;;  %v645_v8 = vld [vmem:[#allocation5 + $0x970] sm:$0xff]  ;;  %v648_v10 = vld [vmem:[#allocation5 + $0x988] sm:$0xff]  ;;  %v647_v15 = vld [vmem:[#allocation5 + $0x980] sm:$0xff] }
 0x138   :  { %v349_v17 = vmax.f32 %v319_v13, 0.0  ;;  %v348_v18 = vmax.f32 %v220_v14, 0.0  ;;  %v223_v19 = vpop.f32.mrb[8].mxu0  ;;  %v1409_v9 = vpack.c.bf16 %v645_v8, %v641_v7  ;;  %v1379_v13 = vpack.c.bf16 %v652_v11, %v648_v10  ;;  %v654_v14 = vld [vmem:[#allocation5 + $0x9b8] sm:$0xff]  ;;  %v684_v1 = vld [vmem:[#allocation5 + $0xaa8] sm:$0xff]  ;;  %v681_v8 = vld [vmem:[#allocation5 + $0xa90] sm:$0xff] }
 0x139   :  { %v350_v21 = vmax.f32 %v321_v16, 0.0  ;;  %v224_v22 = vadd.f32 %v223_v19, %v1699_v32  ;;  %v324_v23 = vpop.f32.mrb[8].mxu1  ;;  %v225_v24 = vpop.f32.mrb[9].mxu0  ;;  %v651_v16 = vld [vmem:[#allocation5 + $0x9a0] sm:$0xff]  ;;  %v649_v19 = vld [vmem:[#allocation5 + $0x990] sm:$0xff]  ;;  %v686_v3 = vld [vmem:[#allocation5 + $0xab8] sm:$0xff] }
 0x13a   :  { %v325_v25 = vadd.f32 %v324_v23, %v1703_v33  ;;  %v226_v28 = vadd.f32 %v225_v24, %v1707_v34  ;;  %v326_v36 = vpop.f32.mrb[9].mxu1  ;;  %509 = vmatprep.mubr.f32.mxu0 %v348_v18  ;;  %v1381_v18 = vpack.c.bf16 %v651_v16, %v647_v15  ;;  %v660_v23 = vld [vmem:[#allocation5 + $0x9e8] sm:$0xff]  ;;  %v658_v24 = vld [vmem:[#allocation5 + $0x9d8] sm:$0xff]  ;;  %v687_v16 = vld [vmem:[#allocation5 + $0xac0] sm:$0xff] }
 0x13b   :  { %v327_v37 = vadd.f32 %v326_v36, %v1711_v35  ;;  %604 = vmatprep.mubr.f32.mxu1 %v350_v21  ;;  %510 = vmatmul.mubr.f32.gmra.mrb[18].mxu0 %v347_v20  ;;  %v351_v41 = vmax.f32 %v224_v22, 0.0  ;;  %v653_v20 = vld [vmem:[#allocation5 + $0x9b0] sm:$0xff]  ;;  %v656_v22 = vld [vmem:[#allocation5 + $0x9c8] sm:$0xff]  ;;  %v655_v36 = vld [vmem:[#allocation5 + $0x9c0] sm:$0xff] }
 0x13c   :  { %v353_v38 = vmax.f32 %v325_v25, 0.0  ;;  %v352_v39 = vmax.f32 %v226_v28, 0.0  ;;  %605 = vmatmul.mubr.f32.gmra.mrb[18].mxu1 %v349_v17  ;;  %v229_v40 = vpop.f32.mrb[10].mxu0  ;;  %v1411_v17 = vpack.c.bf16 %v654_v14, %v650_v12  ;;  %v1413_v21 = vpack.c.bf16 %v653_v20, %v649_v19  ;;  %v662_v28 = vld [vmem:[#allocation5 + $0x9f8] sm:$0xff]  ;;  %v688_v11 = vld [vmem:[#allocation5 + $0xac8] sm:$0xff]  ;;  %v689_v20 = vld [vmem:[#allocation5 + $0xad0] sm:$0xff] }
 0x13d   :  { %v354_v42 = vmax.f32 %v327_v37, 0.0  ;;  %v230_v43 = vadd.f32 %v229_v40, %v1699_v32  ;;  %v330_v44 = vpop.f32.mrb[10].mxu1  ;;  %v231_v45 = vpop.f32.mrb[11].mxu0  ;;  %v632_v32 = vld [vmem:[#allocation5 + $0x908] sm:$0xff]  ;;  %v1383_v25 = vpack.c.bf16 %v660_v23, %v656_v22  ;;  %v659_v37 = vld [vmem:[#allocation5 + $0x9e0] sm:$0xff]  ;;  %v657_v40 = vld [vmem:[#allocation5 + $0x9d0] sm:$0xff] }
 0x13e   :  { %v331_v46 = vadd.f32 %v330_v44, %v1703_v33  ;;  %v232_v47 = vadd.f32 %v231_v45, %v1707_v34  ;;  %v332_v48 = vpop.f32.mrb[11].mxu1  ;;  %514 = vmatprep.mubr.f32.mxu0 %v352_v39  ;;  %v636_v33 = vld [vmem:[#allocation5 + $0x928] sm:$0xff]  ;;  %v634_v34 = vld [vmem:[#allocation5 + $0x918] sm:$0xff]  ;;  %v1385_v39 = vpack.c.bf16 %v659_v37, %v655_v36  ;;  %v879_v23 = vld [vmem:[#allocation5 + $0xd00] sm:$0xff] }
 0x13f   :  { %v333_v49 = vadd.f32 %v332_v48, %v1711_v35  ;;  %609 = vmatprep.mubr.f32.mxu1 %v354_v42  ;;  %515 = vmatmul.mubr.f32.gmra.mrb[20].mxu0 %v351_v41  ;;  %v355_v52 = vmax.f32 %v230_v43, 0.0  ;;  %v1371_v54 = vpack.c.bf16 %v636_v33, %v632_v32  ;;  %v638_v35 = vld [vmem:[#allocation5 + $0x938] sm:$0xff]  ;;  %v661_v41 = vld [vmem:[#allocation5 + $0x9f0] sm:$0xff]  ;;  %v664_v43 = vld [vmem:[#allocation5 + $0xa08] sm:$0xff] }
 0x140   :  { %v357_v50 = vmax.f32 %v331_v46, 0.0  ;;  %v356_v51 = vmax.f32 %v232_v47, 0.0  ;;  %610 = vmatmul.mubr.f32.gmra.mrb[20].mxu1 %v353_v38  ;;  %v1403_v57 = vpack.c.bf16 %v638_v35, %v634_v34  ;;  %v1415_v38 = vpack.c.bf16 %v662_v28, %v658_v24  ;;  %v668_v44 = vld [vmem:[#allocation5 + $0xa28] sm:$0xff]  ;;  %v666_v45 = vld [vmem:[#allocation5 + $0xa18] sm:$0xff]  ;;  %v663_v48 = vld [vmem:[#allocation5 + $0xa00] sm:$0xff] }
 0x141   :  { %v358_v53 = vmax.f32 %v333_v49, 0.0  ;;  %1372 = vmatprep.subr.bf16.mxu0 %v1371_v54  ;;  %v1417_v42 = vpack.c.bf16 %v661_v41, %v657_v40  ;;  %v1387_v46 = vpack.c.bf16 %v668_v44, %v664_v43  ;;  %v670_v47 = vld [vmem:[#allocation5 + $0xa38] sm:$0xff]  ;;  %v667_v49 = vld [vmem:[#allocation5 + $0xa20] sm:$0xff]  ;;  %v672_v33 = vld [vmem:[#allocation5 + $0xa48] sm:$0xff] }
 0x142   :  { %519 = vmatprep.mubr.f32.mxu0 %v356_v51  ;;  %1404 = vmatprep.subr.bf16.mxu1 %v1403_v57  ;;  %v1389_v51 = vpack.c.bf16 %v667_v49, %v663_v48  ;;  %v676_v34 = vld [vmem:[#allocation5 + $0xa68] sm:$0xff]  ;;  %v674_v54 = vld [vmem:[#allocation5 + $0xa58] sm:$0xff]  ;;  %v675_v57 = vld [vmem:[#allocation5 + $0xa60] sm:$0xff] }
 0x143   :  { %614 = vmatprep.mubr.f32.mxu1 %v358_v53  ;;  %520 = vmatmul.mubr.f32.gmra.mrb[22].mxu0 %v355_v52  ;;  %v665_v52 = vld [vmem:[#allocation5 + $0xa10] sm:$0xff]  ;;  %v1391_v35 = vpack.c.bf16 %v676_v34, %v672_v33  ;;  %v1393_v59 = vpack.c.bf16 %v675_v57, %v671_v56  ;;  %v692_v12 = vld [vmem:[#allocation5 + $0xae8] sm:$0xff]  ;;  %v694_v15 = vld [vmem:[#allocation5 + $0xaf8] sm:$0xff] }
 0x144   :  { %615 = vmatmul.mubr.f32.gmra.mrb[22].mxu1 %v357_v50  ;;  %781 = vmatprep.mubr.f32.mxu0 %v1609_v0  ;;  %v1419_v50 = vpack.c.bf16 %v670_v47, %v666_v45  ;;  %v669_v53 = vld [vmem:[#allocation5 + $0xa30] sm:$0xff]  ;;  %v1399_v14 = vpack.c.bf16 %v692_v12, %v688_v11  ;;  %v880_v24 = vld [vmem:[#allocation5 + $0xd20] sm:$0xff] }
 0x145   :  { %852 = vmatprep.mubr.f32.mxu1 %v1609_v0  ;;  %1374 = vmatpush1.bf16.msra.mxu0 %v1373_v58  ;;  %v1375_v0 = vpack.c.bf16 %v644_v63, %v640_v62  ;;  %v1421_v32 = vpack.c.bf16 %v669_v53, %v665_v52  ;;  %v1423_v58 = vpack.c.bf16 %v678_v55, %v674_v54  ;;  %v680_v63 = vld [vmem:[#allocation5 + $0xa88] sm:$0xff]  ;;  %v912_v36 = vld [vmem:[#allocation5 + $0x1120] sm:$0xff] }
 0x146   :  { %1406 = vmatpush1.bf16.msra.mxu1 %v1405_v61  ;;  %v677_v61 = vld [vmem:[#allocation5 + $0xa70] sm:$0xff]  ;;  %v1395_v2 = vpack.c.bf16 %v684_v1, %v680_v63  ;;  %v1435_v28 = vpack.c.bf16 %v880_v24, %v879_v23  ;;  %v1103_v40 = vld [vmem:[#allocation7 + $0x4] ss:$0 sm:$0xff] }
 0x147   :  { %1376 = vmatprep.subr.bf16.mxu0 %v1375_v0  ;;  %1408 = vmatprep.subr.bf16.mxu1 %v1407_v5  ;;  %v1425_v62 = vpack.c.bf16 %v677_v61, %v673_v60  ;;  %v682_v0 = vld [vmem:[#allocation5 + $0xa98] sm:$0xff]  ;;  %v683_v5 = vld [vmem:[#allocation5 + $0xaa0] sm:$0xff] }
 0x148   :  { %v1397_v7 = vpack.c.bf16 %v683_v5, %v679_v4 }
 0x149   :  { %1378 = vmatpush1.bf16.msra.mxu0 %v1377_v6  ;;  %v1427_v6 = vpack.c.bf16 %v686_v3, %v682_v0 }
 0x14a   :  { %1410 = vmatpush1.bf16.msra.mxu1 %v1409_v9  ;;  %1380 = vmatprep.subr.bf16.mxu0 %v1379_v13  ;;  %v685_v9 = vld [vmem:[#allocation5 + $0xab0] sm:$0xff]  ;;  %v690_v13 = vld [vmem:[#allocation5 + $0xad8] sm:$0xff] }
 0x14b   :  { %1412 = vmatprep.subr.bf16.mxu1 %v1411_v17  ;;  %v1429_v10 = vpack.c.bf16 %v685_v9, %v681_v8  ;;  %v691_v17 = vld [vmem:[#allocation5 + $0xae0] sm:$0xff] }
 0x14c   :  { %v1401_v19 = vpack.c.bf16 %v691_v17, %v687_v16 }
 0x14d   :  { %1382 = vmatpush1.bf16.msra.mxu0 %v1381_v18  ;;  %v1431_v18 = vpack.c.bf16 %v694_v15, %v690_v13 }
 0x14e   :  { %1414 = vmatpush1.bf16.msra.mxu1 %v1413_v21  ;;  %1384 = vmatprep.subr.bf16.mxu0 %v1383_v25  ;;  %v693_v21 = vld [vmem:[#allocation5 + $0xaf0] sm:$0xff]  ;;  %v911_v25 = vld [vmem:[#allocation5 + $0x1100] sm:$0xff] }
 0x14f   :  { %1416 = vmatprep.subr.bf16.mxu1 %v1415_v38  ;;  %v1433_v22 = vpack.c.bf16 %v693_v21, %v689_v20  ;;  %v1467_v37 = vpack.c.bf16 %v912_v36, %v911_v25  ;;  %v864_v36 = vld [vmem:[#allocation5 + $0xb20] sm:$0xff] }
 0x151   :  { %1386 = vmatpush1.bf16.msra.mxu0 %v1385_v39 }
 0x152   :  { %1418 = vmatpush1.bf16.msra.mxu1 %v1417_v42  ;;  %1388 = vmatprep.subr.bf16.mxu0 %v1387_v46 }
 0x153   :  { %1420 = vmatprep.subr.bf16.mxu1 %v1419_v50 }
 0x155   :  { %1390 = vmatpush1.bf16.msra.mxu0 %v1389_v51 }
 0x156   :  { %1422 = vmatpush1.bf16.msra.mxu1 %v1421_v32  ;;  %1392 = vmatprep.subr.bf16.mxu0 %v1391_v35 }
 0x157   :  { %1424 = vmatprep.subr.bf16.mxu1 %v1423_v58 }
 0x159   :  { %1394 = vmatpush1.bf16.msra.mxu0 %v1393_v59 }
 0x15a   :  { %1426 = vmatpush1.bf16.msra.mxu1 %v1425_v62  ;;  %1396 = vmatprep.subr.bf16.mxu0 %v1395_v2 }
 0x15b   :  { %1428 = vmatprep.subr.bf16.mxu1 %v1427_v6 }
 0x15d   :  { %1398 = vmatpush1.bf16.msra.mxu0 %v1397_v7 }
 0x15e   :  { %1430 = vmatpush1.bf16.msra.mxu1 %v1429_v10  ;;  %1400 = vmatprep.subr.bf16.mxu0 %v1399_v14 }
 0x15f   :  { %1432 = vmatprep.subr.bf16.mxu1 %v1431_v18 }
 0x161   :  { %1402 = vmatpush1.bf16.msra.mxu0 %v1401_v19 }
 0x162   :  { %1434 = vmatpush1.bf16.msra.mxu1 %v1433_v22  ;;  %1436 = vmatprep.subr.bf16.mxu0 %v1435_v28  ;;  %v863_v28 = vld [vmem:[#allocation5 + $0xb00] sm:$0xff] }
 0x163   :  { %1468 = vmatprep.subr.bf16.mxu1 %v1467_v37 }
 0x1f8   :  { %v1137_v38 = vpop.f32.mrb[12].mxu0 }
 0x1f9   :  { %v1187_v39 = vpop.f32.mrb[12].mxu1  ;;  %v1138_v41 = vpop.f32.mrb[13].mxu0 }
 0x1fa   :  { %v1139_v42 = vadd.f32 %v1138_v41, %v1137_v38  ;;  %v1188_v43 = vpop.f32.mrb[13].mxu1  ;;  %v896_v41 = vld [vmem:[#allocation5 + $0xf20] sm:$0xff] }
 0x1fb   :  { %v1189_v44 = vadd.f32 %v1188_v43, %v1187_v39  ;;  %v895_v39 = vld [vmem:[#allocation5 + $0xf00] sm:$0xff] }
 0x1fc   :  { %v497_v45 = vadd.f32 %v1139_v42, %v1103_v40  ;;  %v1140_v46 = vpop.f32.mrb[14].mxu0  ;;  %v881_v42 = vld [vmem:[#allocation5 + $0xd40] sm:$0xff] }
 0x1fd   :  { %v1190_v47 = vpop.f32.mrb[14].mxu1  ;;  %v1141_v48 = vpop.f32.mrb[15].mxu0  ;;  %v882_v43 = vld [vmem:[#allocation5 + $0xd60] sm:$0xff] }
 0x1fe   :  { %v592_v49 = vadd.f32 %v1189_v44, %v497_v45  ;;  %v1142_v50 = vadd.f32 %v1141_v48, %v1140_v46  ;;  %v1191_v51 = vpop.f32.mrb[15].mxu1  ;;  %v913_v44 = vld [vmem:[#allocation5 + $0x1140] sm:$0xff]  ;;  %v1469_v48 = vpack.c.bf16 %v896_v41, %v895_v39 }
 0x1ff   :  { %v1192_v52 = vadd.f32 %v1191_v51, %v1190_v47  ;;  %v914_v45 = vld [vmem:[#allocation5 + $0x1160] sm:$0xff]  ;;  %v1437_v47 = vpack.c.bf16 %v864_v36, %v863_v28 }
 0x200   :  { %v502_v53 = vadd.f32 %v1142_v50, %v1103_v40  ;;  %v620_v57 = vmax.f32 %v592_v49, 0.0  ;;  %v865_v49 = vld [vmem:[#allocation5 + $0xb40] sm:$0xff] }
 0x201   :  { %v866_v50 = vld [vmem:[#allocation5 + $0xb60] sm:$0xff] }
 0x202   :  { %v597_v54 = vadd.f32 %v1192_v52, %v502_v53  ;;  %v1439_v52 = vpack.c.bf16 %v882_v43, %v881_v42  ;;  %v1471_v53 = vpack.c.bf16 %v914_v45, %v913_v44  ;;  %v922_v28 = vld [vmem:[#allocation5 + $0x1260] sm:$0xff] }
 0x203   :  { %v874_v39 = vld [vmem:[#allocation5 + $0xc60] sm:$0xff] }
 0x204   :  { %v621_v58 = vmax.f32 %v597_v54, 0.0  ;;  %v915_v54 = vld [vmem:[#allocation5 + $0x1180] sm:$0xff] }
 0x205   :  { %v905_v43 = vld [vmem:[#allocation5 + $0x1040] sm:$0xff] }
 0x206   :  { %v626_v63 = vadd.f32 %v621_v58, %v620_v57  ;;  %v867_v57 = vld [vmem:[#allocation5 + $0xb80] sm:$0xff] }
 0x207   :  { %v868_v58 = vld [vmem:[#allocation5 + $0xba0] sm:$0xff] }
 0x208   :  { %v906_v44 = vld [vmem:[#allocation5 + $0x1060] sm:$0xff] }
 0x209   :  { %v891_v45 = vld [vmem:[#allocation5 + $0xe80] sm:$0xff] }
 0x20a   :  { %v1143_v32 = vpop.f32.mrb[16].mxu0  ;;  %v1193_v33 = vpop.f32.mrb[16].mxu1 }
 0x20b   :  { %v1144_v34 = vpop.f32.mrb[17].mxu0  ;;  %v1194_v55 = vpop.f32.mrb[17].mxu1 }
 0x20c   :  { %v1145_v35 = vadd.f32 %v1144_v34, %v1143_v32  ;;  %v1195_v56 = vadd.f32 %v1194_v55, %v1193_v33  ;;  %v897_v32 = vld [vmem:[#allocation5 + $0xf40] sm:$0xff]  ;;  %v1441_v55 = vpack.c.bf16 %v866_v50, %v865_v49  ;;  %v1489_v50 = vpack.c.bf16 %v906_v44, %v905_v43 }
 0x20d   :  { %v883_v33 = vld [vmem:[#allocation5 + $0xd80] sm:$0xff] }
 0x20e   :  { %v507_v59 = vadd.f32 %v1145_v35, %v1103_v40  ;;  %v1146_v60 = vpop.f32.mrb[18].mxu0  ;;  %v884_v34 = vld [vmem:[#allocation5 + $0xda0] sm:$0xff] }
 0x20f   :  { %v1196_v61 = vpop.f32.mrb[18].mxu1  ;;  %v1147_v62 = vpop.f32.mrb[19].mxu0  ;;  %v916_v35 = vld [vmem:[#allocation5 + $0x11a0] sm:$0xff] }
 0x210   :  { %v602_v1 = vadd.f32 %v1195_v56, %v507_v59  ;;  %v1148_v0 = vadd.f32 %v1147_v62, %v1146_v60  ;;  %v1197_v2 = vpop.f32.mrb[19].mxu1  ;;  %v1443_v59 = vpack.c.bf16 %v884_v34, %v883_v33  ;;  %v1475_v60 = vpack.c.bf16 %v916_v35, %v915_v54  ;;  %v900_v62 = vld [vmem:[#allocation5 + $0xfa0] sm:$0xff] }
 0x211   :  { %v1198_v3 = vadd.f32 %v1197_v2, %v1196_v61  ;;  %v899_v61 = vld [vmem:[#allocation5 + $0xf80] sm:$0xff] }
 0x212   :  { %v622_v4 = vmax.f32 %v602_v1, 0.0  ;;  %v512_v5 = vadd.f32 %v1148_v0, %v1103_v40  ;;  %v1149_v6 = vpop.f32.mrb[20].mxu0  ;;  %v886_v1 = vld [vmem:[#allocation5 + $0xde0] sm:$0xff] }
 0x213   :  { %v1199_v7 = vpop.f32.mrb[20].mxu1  ;;  %v1150_v8 = vpop.f32.mrb[21].mxu0  ;;  %v917_v0 = vld [vmem:[#allocation5 + $0x11c0] sm:$0xff] }
 0x214   :  { %v627_v9 = vadd.f32 %v626_v63, %v622_v4  ;;  %v607_v10 = vadd.f32 %v1198_v3, %v512_v5  ;;  %v1151_v11 = vadd.f32 %v1150_v8, %v1149_v6  ;;  %v1200_v12 = vpop.f32.mrb[21].mxu1  ;;  %v885_v63 = vld [vmem:[#allocation5 + $0xdc0] sm:$0xff]  ;;  %v1445_v3 = vpack.c.bf16 %v868_v58, %v867_v57 }
 0x215   :  { %v1201_v13 = vadd.f32 %v1200_v12, %v1199_v7  ;;  %v918_v2 = vld [vmem:[#allocation5 + $0x11e0] sm:$0xff]  ;;  %v1477_v4 = vpack.c.bf16 %v900_v62, %v899_v61  ;;  %v1447_v7 = vpack.c.bf16 %v886_v1, %v885_v63 }
 0x216   :  { %v623_v14 = vmax.f32 %v607_v10, 0.0  ;;  %v517_v15 = vadd.f32 %v1151_v11, %v1103_v40  ;;  %v1152_v16 = vpop.f32.mrb[22].mxu0  ;;  %v869_v5 = vld [vmem:[#allocation5 + $0xbc0] sm:$0xff]  ;;  %v1479_v8 = vpack.c.bf16 %v918_v2, %v917_v0 }
 0x217   :  { %v1202_v17 = vpop.f32.mrb[22].mxu1  ;;  %v1153_v18 = vpop.f32.mrb[23].mxu0  ;;  %v870_v6 = vld [vmem:[#allocation5 + $0xbe0] sm:$0xff] }
 0x218   :  { %v628_v19 = vadd.f32 %v627_v9, %v623_v14  ;;  %v612_v20 = vadd.f32 %v1201_v13, %v517_v15  ;;  %v1154_v21 = vadd.f32 %v1153_v18, %v1152_v16  ;;  %v1203_v22 = vpop.f32.mrb[23].mxu1  ;;  %v901_v9 = vld [vmem:[#allocation5 + $0xfc0] sm:$0xff]  ;;  %v1449_v15 = vpack.c.bf16 %v870_v6, %v869_v5 }
 0x219   :  { %v1204_v23 = vadd.f32 %v1203_v22, %v1202_v17  ;;  %v902_v10 = vld [vmem:[#allocation5 + $0xfe0] sm:$0xff] }
 0x21a   :  { %v624_v24 = vmax.f32 %v612_v20, 0.0  ;;  %v522_v25 = vadd.f32 %v1154_v21, %v1103_v40  ;;  %v898_v40 = vld [vmem:[#allocation5 + $0xf60] sm:$0xff]  ;;  %v1481_v16 = vpack.c.bf16 %v902_v10, %v901_v9 }
 0x21b   :  { %v1473_v56 = vpack.c.bf16 %v898_v40, %v897_v32  ;;  %v887_v11 = vld [vmem:[#allocation5 + $0xe00] sm:$0xff] }
 0x21c   :  { %v629_v37 = vadd.f32 %v628_v19, %v624_v24  ;;  %v617_v38 = vadd.f32 %v1204_v23, %v522_v25  ;;  %v888_v12 = vld [vmem:[#allocation5 + $0xe20] sm:$0xff] }
 0x21d   :  { %v919_v13 = vld [vmem:[#allocation5 + $0x1200] sm:$0xff]  ;;  %v1451_v19 = vpack.c.bf16 %v888_v12, %v887_v11 }
 0x21e   :  { %v625_v46 = vmax.f32 %v617_v38, 0.0  ;;  %v920_v14 = vld [vmem:[#allocation5 + $0x1220] sm:$0xff] }
 0x21f   :  { %v871_v17 = vld [vmem:[#allocation5 + $0xc00] sm:$0xff]  ;;  %v1483_v20 = vpack.c.bf16 %v920_v14, %v919_v13 }
 0x220   :  { %v630_v51 = vadd.f32 %v629_v37, %v625_v46  ;;  %v872_v18 = vld [vmem:[#allocation5 + $0xc20] sm:$0xff] }
 0x221   :  { %v903_v21 = vld [vmem:[#allocation5 + $0x1000] sm:$0xff]  ;;  %v1453_v36 = vpack.c.bf16 %v872_v18, %v871_v17 }
 0x222   :  { %782 = vmatmul.mubr.f32.vlgmr.msra.gmra.mrb[24].mxu0 %v630_v51  ;;  %853 = vmatmul.mubr.f32.vlgmr.msra.gmra.mrb[24].mxu1 %v630_v51  ;;  %v904_v22 = vld [vmem:[#allocation5 + $0x1020] sm:$0xff] }
 0x223   :  { %1438 = vmatpush3.bf16.msra.mxu0 %v1437_v47  ;;  %1470 = vmatpush3.bf16.msra.mxu1 %v1469_v48  ;;  %v889_v23 = vld [vmem:[#allocation5 + $0xe40] sm:$0xff]  ;;  %v1485_v37 = vpack.c.bf16 %v904_v22, %v903_v21 }
 0x224   :  { %1440 = vmatprep.subr.bf16.mxu0 %v1439_v52  ;;  %1472 = vmatprep.subr.bf16.mxu1 %v1471_v53  ;;  %v890_v24 = vld [vmem:[#allocation5 + $0xe60] sm:$0xff] }
 0x225   :  { %v921_v25 = vld [vmem:[#allocation5 + $0x1240] sm:$0xff]  ;;  %v1455_v41 = vpack.c.bf16 %v890_v24, %v889_v23 }
 0x226   :  { %v873_v38 = vld [vmem:[#allocation5 + $0xc40] sm:$0xff]  ;;  %v1487_v42 = vpack.c.bf16 %v922_v28, %v921_v25 }
 0x227   :  { %1442 = vmatpush3.bf16.msra.mxu0 %v1441_v55  ;;  %1474 = vmatpush3.bf16.msra.mxu1 %v1473_v56  ;;  %v892_v46 = vld [vmem:[#allocation5 + $0xea0] sm:$0xff]  ;;  %v1457_v49 = vpack.c.bf16 %v874_v39, %v873_v38 }
 0x228   :  { %1444 = vmatprep.subr.bf16.mxu0 %v1443_v59  ;;  %1476 = vmatprep.subr.bf16.mxu1 %v1475_v60  ;;  %v923_v47 = vld [vmem:[#allocation5 + $0x1280] sm:$0xff]  ;;  %v1459_v51 = vpack.c.bf16 %v892_v46, %v891_v45 }
 0x229   :  { %v924_v48 = vld [vmem:[#allocation5 + $0x12a0] sm:$0xff] }
 0x22a   :  { %v1491_v52 = vpack.c.bf16 %v924_v48, %v923_v47  ;;  %v875_v53 = vld [vmem:[#allocation5 + $0xc80] sm:$0xff] }
 0x22b   :  { %1446 = vmatpush3.bf16.msra.mxu0 %v1445_v3  ;;  %1478 = vmatpush3.bf16.msra.mxu1 %v1477_v4  ;;  %v876_v32 = vld [vmem:[#allocation5 + $0xca0] sm:$0xff] }
 0x22c   :  { %1448 = vmatprep.subr.bf16.mxu0 %v1447_v7  ;;  %1480 = vmatprep.subr.bf16.mxu1 %v1479_v8  ;;  %v907_v40 = vld [vmem:[#allocation5 + $0x1080] sm:$0xff]  ;;  %v1461_v33 = vpack.c.bf16 %v876_v32, %v875_v53 }
 0x22d   :  { %v908_v34 = vld [vmem:[#allocation5 + $0x10a0] sm:$0xff] }
 0x22e   :  { %v1493_v54 = vpack.c.bf16 %v908_v34, %v907_v40  ;;  %v893_v35 = vld [vmem:[#allocation5 + $0xec0] sm:$0xff] }
 0x22f   :  { %1450 = vmatpush3.bf16.msra.mxu0 %v1449_v15  ;;  %1482 = vmatpush3.bf16.msra.mxu1 %v1481_v16  ;;  %v894_v55 = vld [vmem:[#allocation5 + $0xee0] sm:$0xff] }
 0x230   :  { %1452 = vmatprep.subr.bf16.mxu0 %v1451_v19  ;;  %1484 = vmatprep.subr.bf16.mxu1 %v1483_v20  ;;  %v925_v56 = vld [vmem:[#allocation5 + $0x12c0] sm:$0xff]  ;;  %v1463_v57 = vpack.c.bf16 %v894_v55, %v893_v35 }
 0x231   :  { %v926_v58 = vld [vmem:[#allocation5 + $0x12e0] sm:$0xff] }
 0x232   :  { %v877_v59 = vld [vmem:[#allocation5 + $0xcc0] sm:$0xff]  ;;  %v1495_v61 = vpack.c.bf16 %v926_v58, %v925_v56 }
 0x233   :  { %1454 = vmatpush3.bf16.msra.mxu0 %v1453_v36  ;;  %1486 = vmatpush3.bf16.msra.mxu1 %v1485_v37  ;;  %v878_v60 = vld [vmem:[#allocation5 + $0xce0] sm:$0xff] }
 0x234   :  { %1456 = vmatprep.subr.bf16.mxu0 %v1455_v41  ;;  %1488 = vmatprep.subr.bf16.mxu1 %v1487_v42  ;;  %v1465_v62 = vpack.c.bf16 %v878_v60, %v877_v59  ;;  %v909_v63 = vld [vmem:[#allocation5 + $0x10c0] sm:$0xff] }
 0x235   :  { %v910_v1 = vld [vmem:[#allocation5 + $0x10e0] sm:$0xff] }
 0x236   :  { %v1497_v0 = vpack.c.bf16 %v910_v1, %v909_v63  ;;  %v695_v2 = vld [vmem:[#allocation7 + $0x5] sm:$0xf] }
 0x237   :  { %1458 = vmatpush3.bf16.msra.mxu0 %v1457_v49  ;;  %1490 = vmatpush3.bf16.msra.mxu1 %v1489_v50  ;;  %v700_v3 = vrot.slane %v695_v2, %v96_v27  ;;  %v708_v4 = vrot.slane %v695_v2, %v104_v29  ;;  %v704_v5 = vrot.slane %v695_v2, %v100_v30 }
 0x238   :  { %1460 = vmatprep.subr.bf16.mxu0 %v1459_v51  ;;  %1492 = vmatprep.subr.bf16.mxu1 %v1491_v52  ;;  %v712_v6 = vrot.slane %v695_v2, %v108_v31 }
 0x23b   :  { %1462 = vmatpush3.bf16.msra.mxu0 %v1461_v33  ;;  %1494 = vmatpush3.bf16.msra.mxu1 %v1493_v54 }
 0x23c   :  { %1464 = vmatprep.subr.bf16.mxu0 %v1463_v57  ;;  %1496 = vmatprep.subr.bf16.mxu1 %v1495_v61 }
 0x23f   :  { %1466 = vmatpush3.bf16.msra.mxu0 %v1465_v62  ;;  %1498 = vmatpush3.bf16.msra.mxu1 %v1497_v0 }
 0x2f5   :  { %v783_v7 = vpop.f32.mrb[24].mxu0  ;;  %v854_v8 = vpop.f32.mrb[24].mxu1 }
 0x2f6   :  { %v784_v9 = vadd.f32 %v783_v7, %v700_v3  ;;  %v855_v10 = vadd.f32 %v854_v8, %v708_v4  ;;  %v785_v11 = vpop.f32.mrb[25].mxu0  ;;  %v856_v12 = vpop.f32.mrb[25].mxu1 }
 0x2f7   :  { %v786_v13 = vadd.f32 %v785_v11, %v704_v5  ;;  %v857_v14 = vadd.f32 %v856_v12, %v712_v6 }
 0x2f8   :  { %v859_v27 = vmax.f32 %v784_v9, 0.0  ;;  %v861_v17 = vmax.f32 %v855_v10, 0.0 }
 0x2f9   :  { %v860_v15 = vmax.f32 %v786_v13, 0.0  ;;  %v862_v16 = vmax.f32 %v857_v14, 0.0 }
 0x2fb   :  { %998 = vmatprep.mubr.f32.mxu0 %v860_v15  ;;  %1068 = vmatprep.mubr.f32.mxu1 %v862_v16 }
 0x2fc   :  { %999 = vmatmul.mubr.f32.vlgmr.msra.gmra.mrb[26].mxu0 %v859_v27  ;;  %1069 = vmatmul.mubr.f32.vlgmr.msra.gmra.mrb[26].mxu1 %v861_v17 }
 0x3cf   :  { %v1237_v29 = vpop.f32.mrb[26].mxu0  ;;  %v1272_v30 = vpop.f32.mrb[26].mxu1 }
 0x3d0   :  { %v1238_v31 = vpop.f32.mrb[27].mxu0  ;;  %v1273_v18 = vpop.f32.mrb[27].mxu1 }
 0x3d1   :  { %v1239_v19 = vadd.f32 %v1238_v31, %v1237_v29  ;;  %v1274_v20 = vadd.f32 %v1273_v18, %v1272_v30 }
 0x3d3   :  { %v1001_v21 = vadd.f32 %v1239_v19, %v1104_v26 }
 0x3d5   :  { %v1071_v22 = vadd.f32 %v1274_v20, %v1001_v21 }
 0x3d7   :  { %1074 = vst [vmem:[#allocation8] sm:$0xff] %v1071_v22 }
 0x3d8   :  { %1585 = shalt.err (!%p1582_p0)
}
 0x3d9   :  { %s1586_s27 = scalar_lea.hbm %s1762_s3, 128 }
 0x3da   :  { %p1587_p1 = scmp.ne.s32.totalorder %s1762_s3, %s1586_s27  ;;  %p1590_p2 = scmp.lt.u32.totalorder %s1586_s27, %s1762_s3 }
 0x3dc   :  { %p1592_p3 = pnand %p1590_p2, %p1587_p1 }
 0x3de   :  { %1595 = shalt.err (!%p1592_p3)
}
 0x3df   :  { %1084 = dma.vmem_to_hbm [thread:$0]  %s1082_s23, 128, %s1762_s3, [#allocation4]  }
 0x3e0   :  { %1600 = dma.done.wait [#allocation4], 128  }
 0x3e1   :  { %1601 = vsyncadd [#allocation4], 4294967168 }
 0x3e2   :  { %1088 = vsyncpa [#allocation3], 1 }
 0x3e3   :  { %1089 = vsyncpa [#allocation6], 1 }
 0x3e4   :  { %1090 = vsyncpa [#allocation4], 1 }

</bundles_post_ra>
